<compile_context>
chip_gen: v7x
topology: tpu7x:2x2x1
jax: 0.10.0
libtpu: 0.0.40
codegen_flags: <defaults>
</compile_context>

<pallas_src>
import functools

import jax
import jax.numpy as jnp
from jax.experimental import pallas as pl
from jax.experimental.pallas import tpu as pltpu


# ------------------------------ fused kernel -------------------------------

def _encoder_kernel(patch_ref, cw_ref, cb_ref, pw_ref, pb_ref,
                    xt_ref, wt_ref, bt_ref, wro_ref, bro_ref,
                    o_ref, *, batch, hw, seq):
    """Entire Encoder_semantic_text_image forward in a single launch.

    patch_ref : [B*H*W, 9*C]  im2col patches (tap-major, channel-minor lanes)
    cw_ref    : [9*C, Cout]   flattened conv weight
    cb_ref    : [1, Cout]
    pw_ref    : [Cout, F_img] image proj weight, pb_ref: [1, F_img]
    xt_ref    : [B*T, D]      text tokens
    wt_ref    : [D, F_txt]    txt weight,        bt_ref: [1, F_txt]
    wro_ref   : [F_img+F_txt, out_dim] stacked readout weight
    bro_ref   : [1, out_dim]
    """
    # ---- image core: 3x3 SAME conv as ONE K=9*C contraction + ReLU --------
    conv = jnp.maximum(
        jnp.dot(patch_ref[...], cw_ref[...],
                preferred_element_type=jnp.float32) + cb_ref[...],
        0.0)                                               # [B*H*W, Cout]

    # global spatial mean per batch as one MXU contraction; mean matrix is
    # generated in-kernel (iota + select), never touches HBM.
    n_img = batch * hw
    row_i = jax.lax.broadcasted_iota(jnp.int32, (batch, n_img), 1)
    bid_i = jax.lax.broadcasted_iota(jnp.int32, (batch, n_img), 0)
    m_img = jnp.where((row_i >= bid_i * hw) & (row_i < (bid_i + 1) * hw),
                      1.0 / hw, 0.0).astype(jnp.float32)   # [B, B*H*W]
    pooled = jnp.dot(m_img, conv,
                     preferred_element_type=jnp.float32)   # [B, Cout]
    feats_img = jnp.maximum(
        jnp.dot(pooled, pw_ref[...], preferred_element_type=jnp.float32)
        + pb_ref[...], 0.0)                                # [B, F_img]

    # ---- text core: per-token linear + ReLU, then per-batch token mean ----
    h_txt = jnp.maximum(
        jnp.dot(xt_ref[...], wt_ref[...], preferred_element_type=jnp.float32)
        + bt_ref[...], 0.0)                                # [B*T, F_txt]
    n_txt = batch * seq
    row_t = jax.lax.broadcasted_iota(jnp.int32, (batch, n_txt), 1)
    bid_t = jax.lax.broadcasted_iota(jnp.int32, (batch, n_txt), 0)
    m_txt = jnp.where((row_t >= bid_t * seq) & (row_t < (bid_t + 1) * seq),
                      1.0 / seq, 0.0).astype(jnp.float32)  # [B, B*T]
    feats_txt = jnp.dot(m_txt, h_txt,
                        preferred_element_type=jnp.float32)  # [B, F_txt]

    # ---- readout: single stacked matmul on concatenated features ----------
    feats = jnp.concatenate([feats_img, feats_txt], axis=-1)  # [B, F_img+F_txt]
    out = jnp.dot(feats, wro_ref[...],
                  preferred_element_type=jnp.float32) + bro_ref[...]
    o_ref[...] = out.astype(o_ref.dtype)


# ------------------------------ wrapper -------------------------------------

def encoder_semantic_text_image(x, img, params):
    """Mirrors Encoder_semantic_text_image.forward(x, img) — one pallas_call."""
    B, C, H, W = img.shape
    _, T, D = x.shape

    # --- tiny im2col in the wrapper: lane-dense, sublane-aligned patches ----
    # [B,C,H,W] -> pad -> NHWC -> concat 9 shifted views along channel lanes.
    imgp = jnp.pad(img, ((0, 0), (0, 0), (1, 1), (1, 1)))        # [B,C,H+2,W+2]
    imgp = imgp.transpose(0, 2, 3, 1)                            # [B,Hp,Wp,C]
    taps = [imgp[:, dy:dy + H, dx:dx + W, :]
            for dy in range(3) for dx in range(3)]               # 9 x [B,H,W,C]
    patches = jnp.concatenate(taps, axis=-1).reshape(B * H * W, 9 * C)

    x2d = x.reshape(B * T, D)

    p_img, p_txt, p_ro = params["core_img"], params["core_txt"], params["readout"]
    c_out = p_img["conv_w"].shape[2]
    f_img = p_img["proj_w"].shape[1]
    f_txt = p_txt["w"].shape[1]
    out_dim = p_ro["w"].shape[1]

    # flat 2-D conv weight (tap-major, channel-minor) — matches patch lanes
    conv_w2d = p_img["conv_w"].reshape(9 * C, c_out)

    inputs = (
        patches, conv_w2d, p_img["conv_b"].reshape(1, c_out),
        p_img["proj_w"], p_img["proj_b"].reshape(1, f_img),
        x2d, p_txt["w"], p_txt["b"].reshape(1, f_txt),
        p_ro["w"], p_ro["b"].reshape(1, out_dim),
    )

    def full_spec(shape):
        zeros = (0,) * len(shape)
        return pl.BlockSpec(shape, lambda i, _z=zeros: _z)

    kernel = functools.partial(_encoder_kernel, batch=B, hw=H * W, seq=T)
    return pl.pallas_call(
        kernel,
        # torch reference computes in f32 -> keep f32 output (no bf16 truncation)
        out_shape=jax.ShapeDtypeStruct((B, out_dim), jnp.float32),
        grid=(1,),
        in_specs=[full_spec(a.shape) for a in inputs],
        out_specs=full_spec((B, out_dim)),
        compiler_params=pltpu.CompilerParams(
            dimension_semantics=("arbitrary",),
            vmem_limit_bytes=32 * 1024 * 1024),
    )(*inputs)


# --------------------------- params / main ----------------------------------

def init_params(key, *, c_in=4, c_out=8, f_img=32, d_txt=32, f_txt=32,
                out_dim=16):
    ks = jax.random.split(key, 4)

    def w(k, shape, scale=0.1):
        return jax.random.normal(k, shape, jnp.float32) * scale

    return {
        "core_img": {
            "conv_w": w(ks[0], (9, c_in, c_out)),      # per-tap C_in x C_out
            "conv_b": jnp.zeros((c_out,), jnp.float32),
            "proj_w": w(ks[1], (c_out, f_img)),
            "proj_b": jnp.zeros((f_img,), jnp.float32),
        },
        "core_txt": {
            "w": w(ks[2], (d_txt, f_txt)),
            "b": jnp.zeros((f_txt,), jnp.float32),
        },
        "readout": {
            "w": w(ks[3], (f_img + f_txt, out_dim)),   # stacked [W_img; W_txt]
            "b": jnp.zeros((out_dim,), jnp.float32),
        },
    }


if __name__ == "__main__":
    B, C, H, W = 2, 4, 16, 16
    T, D = 8, 32

    root = jax.random.PRNGKey(0)
    k_params, k_img, k_txt = jax.random.split(root, 3)

    params = init_params(k_params, c_in=C, d_txt=D)
    img = jax.random.normal(k_img, (B, C, H, W), jnp.float32)   # NCHW like torch
    x = jax.random.normal(k_txt, (B, T, D), jnp.float32)        # text embeddings

    out = encoder_semantic_text_image(x, img, params)
    out = jax.block_until_ready(out)
    assert out.shape == (B, 16) and out.dtype == jnp.float32
    assert bool(jnp.all(jnp.isfinite(out)))
    print("KERNEL_OK")
</pallas_src>

<mosaic_0001>
module attributes {stable_mosaic.version = 11 : i64} {
  func.func @_encoder_kernel(%arg0: i32, %arg1: memref<512x36xf32, #tpu.memory_space<vmem>>, %arg2: memref<36x8xf32, #tpu.memory_space<vmem>>, %arg3: memref<1x8xf32, #tpu.memory_space<vmem>>, %arg4: memref<8x32xf32, #tpu.memory_space<vmem>>, %arg5: memref<1x32xf32, #tpu.memory_space<vmem>>, %arg6: memref<16x32xf32, #tpu.memory_space<vmem>>, %arg7: memref<32x32xf32, #tpu.memory_space<vmem>>, %arg8: memref<1x32xf32, #tpu.memory_space<vmem>>, %arg9: memref<64x16xf32, #tpu.memory_space<vmem>>, %arg10: memref<1x16xf32, #tpu.memory_space<vmem>>, %arg11: memref<2x16xf32, #tpu.memory_space<vmem>>) attributes {dimension_semantics = [#tpu.dimension_semantics<arbitrary>], iteration_bounds = array<i64: 1>, scalar_prefetch = 0 : i64, scratch_operands = 0 : i64, tpu.core_type = #tpu.core_type<tc>, window_params = [{pipeline_mode = #tpu.pipeline_mode<synchronous>, transform_indices = @transform_0, window_bounds = array<i64: 512, 36>}, {pipeline_mode = #tpu.pipeline_mode<synchronous>, transform_indices = @transform_1, window_bounds = array<i64: 36, 8>}, {pipeline_mode = #tpu.pipeline_mode<synchronous>, transform_indices = @transform_2, window_bounds = array<i64: 1, 8>}, {pipeline_mode = #tpu.pipeline_mode<synchronous>, transform_indices = @transform_3, window_bounds = array<i64: 8, 32>}, {pipeline_mode = #tpu.pipeline_mode<synchronous>, transform_indices = @transform_4, window_bounds = array<i64: 1, 32>}, {pipeline_mode = #tpu.pipeline_mode<synchronous>, transform_indices = @transform_5, window_bounds = array<i64: 16, 32>}, {pipeline_mode = #tpu.pipeline_mode<synchronous>, transform_indices = @transform_6, window_bounds = array<i64: 32, 32>}, {pipeline_mode = #tpu.pipeline_mode<synchronous>, transform_indices = @transform_7, window_bounds = array<i64: 1, 32>}, {pipeline_mode = #tpu.pipeline_mode<synchronous>, transform_indices = @transform_8, window_bounds = array<i64: 64, 16>}, {pipeline_mode = #tpu.pipeline_mode<synchronous>, transform_indices = @transform_9, window_bounds = array<i64: 1, 16>}, {pipeline_mode = #tpu.pipeline_mode<synchronous>, transform_indices = @transform_10, window_bounds = array<i64: 2, 16>}]} {
    %c0 = arith.constant 0 : index
    %c0_0 = arith.constant 0 : index
    %0 = vector.load %arg1[%c0, %c0_0] : memref<512x36xf32, #tpu.memory_space<vmem>>, vector<512x36xf32>
    %c0_1 = arith.constant 0 : index
    %c0_2 = arith.constant 0 : index
    %1 = vector.load %arg2[%c0_1, %c0_2] : memref<36x8xf32, #tpu.memory_space<vmem>>, vector<36x8xf32>
    %cst = arith.constant dense<0.000000e+00> : vector<512x8xf32>
    %2 = tpu.matmul %0, %1, %cst {dimension_numbers = #tpu.dot_dimension_numbers<[1], [0], [0], [1], [0, 0, 1, 1], [], []>} : vector<512x36xf32>, vector<36x8xf32>, vector<512x8xf32> -> vector<512x8xf32>
    %c0_3 = arith.constant 0 : index
    %c0_4 = arith.constant 0 : index
    %3 = vector.load %arg3[%c0_3, %c0_4] : memref<1x8xf32, #tpu.memory_space<vmem>>, vector<1x8xf32>
    %4 = vector.broadcast %3 : vector<1x8xf32> to vector<512x8xf32>
    %5 = arith.addf %2, %4 : vector<512x8xf32>
    %cst_5 = arith.constant 0.000000e+00 : f32
    %6 = vector.broadcast %cst_5 : f32 to vector<512x8xf32>
    %7 = arith.maximumf %5, %6 : vector<512x8xf32>
    %8 = tpu.iota {dimensions = array<i32: 1>} : vector<2x512xi32>
    %9 = tpu.iota {dimensions = array<i32: 0>} : vector<2x512xi32>
    %c256_i32 = arith.constant 256 : i32
    %10 = vector.broadcast %c256_i32 : i32 to vector<2x512xi32>
    %11 = arith.muli %9, %10 : vector<2x512xi32>
    %12 = arith.cmpi sge, %8, %11 : vector<2x512xi32>
    %c1_i32 = arith.constant 1 : i32
    %13 = vector.broadcast %c1_i32 : i32 to vector<2x512xi32>
    %14 = arith.addi %9, %13 : vector<2x512xi32>
    %c256_i32_6 = arith.constant 256 : i32
    %15 = vector.broadcast %c256_i32_6 : i32 to vector<2x512xi32>
    %16 = arith.muli %14, %15 : vector<2x512xi32>
    %17 = arith.cmpi slt, %8, %16 : vector<2x512xi32>
    %18 = arith.andi %12, %17 : vector<2x512xi1>
    %cst_7 = arith.constant 3.906250e-03 : f32
    %cst_8 = arith.constant 0.000000e+00 : f32
    %19 = vector.broadcast %cst_7 : f32 to vector<2x512xf32>
    %20 = vector.broadcast %cst_8 : f32 to vector<2x512xf32>
    %21 = arith.select %18, %19, %20 : vector<2x512xi1>, vector<2x512xf32>
    %cst_9 = arith.constant dense<0.000000e+00> : vector<2x8xf32>
    %22 = tpu.matmul %21, %7, %cst_9 {dimension_numbers = #tpu.dot_dimension_numbers<[1], [0], [0], [1], [0, 0, 1, 1], [], []>} : vector<2x512xf32>, vector<512x8xf32>, vector<2x8xf32> -> vector<2x8xf32>
    %c0_10 = arith.constant 0 : index
    %c0_11 = arith.constant 0 : index
    %23 = vector.load %arg4[%c0_10, %c0_11] : memref<8x32xf32, #tpu.memory_space<vmem>>, vector<8x32xf32>
    %cst_12 = arith.constant dense<0.000000e+00> : vector<2x32xf32>
    %24 = tpu.matmul %22, %23, %cst_12 {dimension_numbers = #tpu.dot_dimension_numbers<[1], [0], [0], [1], [0, 0, 1, 1], [], []>} : vector<2x8xf32>, vector<8x32xf32>, vector<2x32xf32> -> vector<2x32xf32>
    %c0_13 = arith.constant 0 : index
    %c0_14 = arith.constant 0 : index
    %25 = vector.load %arg5[%c0_13, %c0_14] : memref<1x32xf32, #tpu.memory_space<vmem>>, vector<1x32xf32>
    %26 = vector.broadcast %25 : vector<1x32xf32> to vector<2x32xf32>
    %27 = arith.addf %24, %26 : vector<2x32xf32>
    %cst_15 = arith.constant 0.000000e+00 : f32
    %28 = vector.broadcast %cst_15 : f32 to vector<2x32xf32>
    %29 = arith.maximumf %27, %28 : vector<2x32xf32>
    %c0_16 = arith.constant 0 : index
    %c0_17 = arith.constant 0 : index
    %30 = vector.load %arg6[%c0_16, %c0_17] : memref<16x32xf32, #tpu.memory_space<vmem>>, vector<16x32xf32>
    %c0_18 = arith.constant 0 : index
    %c0_19 = arith.constant 0 : index
    %31 = vector.load %arg7[%c0_18, %c0_19] : memref<32x32xf32, #tpu.memory_space<vmem>>, vector<32x32xf32>
    %cst_20 = arith.constant dense<0.000000e+00> : vector<16x32xf32>
    %32 = tpu.matmul %30, %31, %cst_20 {dimension_numbers = #tpu.dot_dimension_numbers<[1], [0], [0], [1], [0, 0, 1, 1], [], []>} : vector<16x32xf32>, vector<32x32xf32>, vector<16x32xf32> -> vector<16x32xf32>
    %c0_21 = arith.constant 0 : index
    %c0_22 = arith.constant 0 : index
    %33 = vector.load %arg8[%c0_21, %c0_22] : memref<1x32xf32, #tpu.memory_space<vmem>>, vector<1x32xf32>
    %34 = vector.broadcast %33 : vector<1x32xf32> to vector<16x32xf32>
    %35 = arith.addf %32, %34 : vector<16x32xf32>
    %cst_23 = arith.constant 0.000000e+00 : f32
    %36 = vector.broadcast %cst_23 : f32 to vector<16x32xf32>
    %37 = arith.maximumf %35, %36 : vector<16x32xf32>
    %38 = tpu.iota {dimensions = array<i32: 1>} : vector<2x16xi32>
    %39 = tpu.iota {dimensions = array<i32: 0>} : vector<2x16xi32>
    %c8_i32 = arith.constant 8 : i32
    %40 = vector.broadcast %c8_i32 : i32 to vector<2x16xi32>
    %41 = arith.muli %39, %40 : vector<2x16xi32>
    %42 = arith.cmpi sge, %38, %41 : vector<2x16xi32>
    %c1_i32_24 = arith.constant 1 : i32
    %43 = vector.broadcast %c1_i32_24 : i32 to vector<2x16xi32>
    %44 = arith.addi %39, %43 : vector<2x16xi32>
    %c8_i32_25 = arith.constant 8 : i32
    %45 = vector.broadcast %c8_i32_25 : i32 to vector<2x16xi32>
    %46 = arith.muli %44, %45 : vector<2x16xi32>
    %47 = arith.cmpi slt, %38, %46 : vector<2x16xi32>
    %48 = arith.andi %42, %47 : vector<2x16xi1>
    %cst_26 = arith.constant 1.250000e-01 : f32
    %cst_27 = arith.constant 0.000000e+00 : f32
    %49 = vector.broadcast %cst_26 : f32 to vector<2x16xf32>
    %50 = vector.broadcast %cst_27 : f32 to vector<2x16xf32>
    %51 = arith.select %48, %49, %50 : vector<2x16xi1>, vector<2x16xf32>
    %cst_28 = arith.constant dense<0.000000e+00> : vector<2x32xf32>
    %52 = tpu.matmul %51, %37, %cst_28 {dimension_numbers = #tpu.dot_dimension_numbers<[1], [0], [0], [1], [0, 0, 1, 1], [], []>} : vector<2x16xf32>, vector<16x32xf32>, vector<2x32xf32> -> vector<2x32xf32>
    %53 = tpu.concatenate %29, %52 in 1 : vector<2x32xf32>, vector<2x32xf32> -> vector<2x64xf32>
    %c0_29 = arith.constant 0 : index
    %c0_30 = arith.constant 0 : index
    %54 = vector.load %arg9[%c0_29, %c0_30] : memref<64x16xf32, #tpu.memory_space<vmem>>, vector<64x16xf32>
    %cst_31 = arith.constant dense<0.000000e+00> : vector<2x16xf32>
    %55 = tpu.matmul %53, %54, %cst_31 {dimension_numbers = #tpu.dot_dimension_numbers<[1], [0], [0], [1], [0, 0, 1, 1], [], []>} : vector<2x64xf32>, vector<64x16xf32>, vector<2x16xf32> -> vector<2x16xf32>
    %c0_32 = arith.constant 0 : index
    %c0_33 = arith.constant 0 : index
    %56 = vector.load %arg10[%c0_32, %c0_33] : memref<1x16xf32, #tpu.memory_space<vmem>>, vector<1x16xf32>
    %57 = vector.broadcast %56 : vector<1x16xf32> to vector<2x16xf32>
    %58 = arith.addf %55, %57 : vector<2x16xf32>
    %c0_34 = arith.constant 0 : index
    %c0_35 = arith.constant 0 : index
    %59 = vector.load %arg11[%c0_34, %c0_35] : memref<2x16xf32, #tpu.memory_space<vmem>>, vector<2x16xf32>
    tpu.vector_store %arg11[%c0_34, %c0_35], %58 {strides = array<i32>} : memref<2x16xf32, #tpu.memory_space<vmem>>, vector<2x16xf32>,
    return
  }
  func.func @transform_0(%arg0: i32) -> (i32, i32) {
    %c0_i32 = arith.constant 0 : i32
    %c0_i32_0 = arith.constant 0 : i32
    %c0_i32_1 = arith.constant 0 : i32
    return %c0_i32, %c0_i32_0 : i32, i32
  }
  func.func @transform_1(%arg0: i32) -> (i32, i32) {
    %c0_i32 = arith.constant 0 : i32
    %c0_i32_0 = arith.constant 0 : i32
    %c0_i32_1 = arith.constant 0 : i32
    return %c0_i32, %c0_i32_0 : i32, i32
  }
  func.func @transform_2(%arg0: i32) -> (i32, i32) {
    %c0_i32 = arith.constant 0 : i32
    %c0_i32_0 = arith.constant 0 : i32
    %c0_i32_1 = arith.constant 0 : i32
    return %c0_i32, %c0_i32_0 : i32, i32
  }
  func.func @transform_3(%arg0: i32) -> (i32, i32) {
    %c0_i32 = arith.constant 0 : i32
    %c0_i32_0 = arith.constant 0 : i32
    %c0_i32_1 = arith.constant 0 : i32
    return %c0_i32, %c0_i32_0 : i32, i32
  }
  func.func @transform_4(%arg0: i32) -> (i32, i32) {
    %c0_i32 = arith.constant 0 : i32
    %c0_i32_0 = arith.constant 0 : i32
    %c0_i32_1 = arith.constant 0 : i32
    return %c0_i32, %c0_i32_0 : i32, i32
  }
  func.func @transform_5(%arg0: i32) -> (i32, i32) {
    %c0_i32 = arith.constant 0 : i32
    %c0_i32_0 = arith.constant 0 : i32
    %c0_i32_1 = arith.constant 0 : i32
    return %c0_i32, %c0_i32_0 : i32, i32
  }
  func.func @transform_6(%arg0: i32) -> (i32, i32) {
    %c0_i32 = arith.constant 0 : i32
    %c0_i32_0 = arith.constant 0 : i32
    %c0_i32_1 = arith.constant 0 : i32
    return %c0_i32, %c0_i32_0 : i32, i32
  }
  func.func @transform_7(%arg0: i32) -> (i32, i32) {
    %c0_i32 = arith.constant 0 : i32
    %c0_i32_0 = arith.constant 0 : i32
    %c0_i32_1 = arith.constant 0 : i32
    return %c0_i32, %c0_i32_0 : i32, i32
  }
  func.func @transform_8(%arg0: i32) -> (i32, i32) {
    %c0_i32 = arith.constant 0 : i32
    %c0_i32_0 = arith.constant 0 : i32
    %c0_i32_1 = arith.constant 0 : i32
    return %c0_i32, %c0_i32_0 : i32, i32
  }
  func.func @transform_9(%arg0: i32) -> (i32, i32) {
    %c0_i32 = arith.constant 0 : i32
    %c0_i32_0 = arith.constant 0 : i32
    %c0_i32_1 = arith.constant 0 : i32
    return %c0_i32, %c0_i32_0 : i32, i32
  }
  func.func @transform_10(%arg0: i32) -> (i32, i32) {
    %c0_i32 = arith.constant 0 : i32
    %c0_i32_0 = arith.constant 0 : i32
    %c0_i32_1 = arith.constant 0 : i32
    return %c0_i32, %c0_i32_0 : i32, i32
  }
}

</mosaic_0001>

<bundles_post_ra>
// kernel: tpu_custom_call.1
= control target key start
LH: loop header
LB: loop body
LE: loop exit
PB: predicated region body
PF: predicated region fallthrough
CT: control target
= control target key end

     0   :  { %vm112_vm0 = vcmask 293888   ;;  %vm305_vm1 = vcmask 1043456   ;;  %s2365_s0 = inlined_call_operand.vmem [shape: f32[512,36], index: 0, kind: input, shape index: {}]   ;;  %s2366_s1 = inlined_call_operand.vmem [shape: f32[36,8], index: 1, kind: input, shape index: {}]   ;;  %s2367_s2 = inlined_call_operand.vmem [shape: f32[1,8], index: 2, kind: input, shape index: {}]   ;;  %s2368_s3 = inlined_call_operand.vmem [shape: f32[8,32], index: 3, kind: input, shape index: {}]   ;;  %s2369_s4 = inlined_call_operand.vmem [shape: f32[1,32], index: 4, kind: input, shape index: {}]   ;;  %s2370_s5 = inlined_call_operand.vmem [shape: f32[16,32], index: 5, kind: input, shape index: {}]   ;;  %s2371_s6 = inlined_call_operand.vmem [shape: f32[32,32], index: 6, kind: input, shape index: {}]   ;;  %s2372_s7 = inlined_call_operand.vmem [shape: f32[1,32], index: 7, kind: input, shape index: {}]   ;;  %s2373_s8 = inlined_call_operand.vmem [shape: f32[64,16], index: 8, kind: input, shape index: {}]   ;;  %s2374_s9 = inlined_call_operand.vmem [shape: f32[1,16], index: 9, kind: input, shape index: {}]   ;;  %s2375_s10 = inlined_call_operand.hbm [shape: f32[2,16], index: 10, kind: output, shape index: {}]  }
   0x1   :  { %v100_v0 = vld [vmem:[%s2366_s1] sm:$0xff]  ;;  %v101_v1 = vld [vmem:[%s2366_s1 + $0x8] sm:$0xff]  ;;  %v102_v2 = vld [vmem:[%s2366_s1 + $0x10] sm:$0xff] }
   0x2   :  { %v1679_v3 = vpack.c.bf16 %v101_v1, %v100_v0  ;;  %v103_v4 = vld [vmem:[%s2366_s1 + $0x18] sm:$0xff]  ;;  %v36_v5 = vld [vmem:[%s2365_s0] sm:$0xff]  ;;  %v37_v8 = vld [vmem:[%s2365_s0 + $0x8] sm:$0xff] }
   0x3   :  { %v1683_v6 = vpack.c.bf16 %v103_v4, %v102_v2  ;;  %1541 = vmatprep.mubr.msk.f32.mxu0 %vm112_vm0, %v36_v5  ;;  %v104_v7 = vld [vmem:[%s2366_s1 + $0x20] sm:$0xf]  ;;  %v38_v9 = vld [vmem:[%s2365_s0 + $0x10] sm:$0xff]  ;;  %v39_v10 = vld [vmem:[%s2365_s0 + $0x18] sm:$0xff] }
   0x4   :  { %1680 = vmatprep.subr.bf16.mxu0 %v1679_v3  ;;  %v40_v11 = vld [vmem:[%s2365_s0 + $0x20] sm:$0xff]  ;;  %v41_v12 = vld [vmem:[%s2365_s0 + $0x28] sm:$0xff]  ;;  %v42_v13 = vld [vmem:[%s2365_s0 + $0x30] sm:$0xff] }
   0x5   :  { %1682 = vmatpush3.bf16.msra.mxu0 %v1679_v3  ;;  %v43_v14 = vld [vmem:[%s2365_s0 + $0x38] sm:$0xff]  ;;  %v44_v15 = vld [vmem:[%s2365_s0 + $0x40] sm:$0xff] }
   0x6   :  { %1684 = vmatprep.subr.bf16.mxu0 %v1683_v6 }
   0x9   :  { %1686 = vmatpush3.bf16.msra.mxu0 %v1683_v6 }
   0xa   :  { %1539 = vmatprep.subr.msk.mxu0 %vm305_vm1, %v104_v7 }
   0xd   :  { %1540 = vmatpush3.msk.msra.mxu0 %vm305_vm1, %v104_v7 }
   0xe   :  { %1542 = vmatmul.mubr.msk.f32.vlgmr.msra.gmra.mrb[0].mxu0 %vm112_vm0, %v37_v8 }
   0xf   :  { %1544 = vmatprep.mubr.msk.f32.mxu0 %vm112_vm0, %v38_v9 }
  0x12   :  { %1545 = vmatmul.mubr.msk.f32.gmra.mrb[2].mxu0 %vm112_vm0, %v39_v10 }
  0x13   :  { %1547 = vmatprep.mubr.msk.f32.mxu0 %vm112_vm0, %v40_v11 }
  0x16   :  { %1548 = vmatmul.mubr.msk.f32.gmra.mrb[4].mxu0 %vm112_vm0, %v41_v12 }
  0x17   :  { %1550 = vmatprep.mubr.msk.f32.mxu0 %vm112_vm0, %v42_v13 }
  0x18   :  { %15 = vsyncpa [#allocation3], 0  ;;  %v45_v16 = vld [vmem:[%s2365_s0 + $0x48] sm:$0xff]  ;;  %v46_v17 = vld [vmem:[%s2365_s0 + $0x50] sm:$0xff]  ;;  %v758_v7 = vlaneseq  ;;  %vm1806_vm14 = vmmov 0   ;;  %vm932_vm15 = vcmask 64512  }
  0x19   :  { %v47_v18 = vld [vmem:[%s2365_s0 + $0x58] sm:$0xff]  ;;  %v48_v19 = vld [vmem:[%s2365_s0 + $0x60] sm:$0xff]  ;;  %v49_v20 = vld [vmem:[%s2365_s0 + $0x68] sm:$0xff]  ;;  %s1808_s30 = smov 32   ;;  %s1809_s13 = smov [#allocation2]  }
  0x1a   :  { %1551 = vmatmul.mubr.msk.f32.gmra.mrb[6].mxu0 %vm112_vm0, %v43_v14  ;;  %v50_v21 = vld [vmem:[%s2365_s0 + $0x70] sm:$0xff]  ;;  %v51_v22 = vld [vmem:[%s2365_s0 + $0x78] sm:$0xff]  ;;  %v52_v23 = vld [vmem:[%s2365_s0 + $0x80] sm:$0xff]  ;;  %v2136_v8 = vshrl.u32 %v758_v7, 7  ;;  %v2138_v9 = vand.u32 127, %v758_v7  ;;  %v1804_v14 = vmov 0.00390625  }
  0x1b   :  { %1553 = vmatprep.mubr.msk.f32.mxu0 %vm112_vm0, %v44_v15  ;;  %v53_v24 = vld [vmem:[%s2365_s0 + $0x88] sm:$0xff]  ;;  %v54_v25 = vld [vmem:[%s2365_s0 + $0x90] sm:$0xff]  ;;  %v55_v26 = vld [vmem:[%s2365_s0 + $0x98] sm:$0xff] }
  0x1c   :  { %v56_v27 = vld [vmem:[%s2365_s0 + $0xa0] sm:$0xff]  ;;  %v57_v28 = vld [vmem:[%s2365_s0 + $0xa8] sm:$0xff]  ;;  %v58_v29 = vld [vmem:[%s2365_s0 + $0xb0] sm:$0xff]  ;;  %v2141_v10 = vadd.s32 1, %v2136_v8  ;;  %v760_v11 = vadd.s32 128, %v2138_v9  ;;  %v765_v12 = vmul.u32 256, %v2136_v8 }
  0x1d   :  { %v59_v30 = vld [vmem:[%s2365_s0 + $0xb8] sm:$0xff]  ;;  %v60_v31 = vld [vmem:[%s2365_s0 + $0xc0] sm:$0xff]  ;;  %v61_v32 = vld [vmem:[%s2365_s0 + $0xc8] sm:$0xff] }
  0x1e   :  { %1554 = vmatmul.mubr.msk.f32.gmra.mrb[8].mxu0 %vm112_vm0, %v45_v16  ;;  %v62_v33 = vld [vmem:[%s2365_s0 + $0xd0] sm:$0xff]  ;;  %v63_v34 = vld [vmem:[%s2365_s0 + $0xd8] sm:$0xff]  ;;  %v64_v35 = vld [vmem:[%s2365_s0 + $0xe0] sm:$0xff]  ;;  %v771_v13 = vmul.u32 256, %v2141_v10  ;;  %vm767_vm2 = vcmp.ge.s32.totalorder %v760_v11, %v765_v12  ;;  %vm766_vm5 = vcmp.ge.s32.totalorder %v2138_v9, %v765_v12 }
  0x1f   :  { %1556 = vmatprep.mubr.msk.f32.mxu0 %vm112_vm0, %v46_v17  ;;  %v65_v36 = vld [vmem:[%s2365_s0 + $0xe8] sm:$0xff]  ;;  %v66_v37 = vld [vmem:[%s2365_s0 + $0xf0] sm:$0xff]  ;;  %v67_v38 = vld [vmem:[%s2365_s0 + $0xf8] sm:$0xff] }
  0x20   :  { %v68_v39 = vld [vmem:[%s2365_s0 + $0x100] sm:$0xff]  ;;  %v69_v40 = vld [vmem:[%s2365_s0 + $0x108] sm:$0xff]  ;;  %v70_v41 = vld [vmem:[%s2365_s0 + $0x110] sm:$0xff]  ;;  %vm773_vm3 = vcmp.lt.s32.totalorder %v760_v11, %v771_v13  ;;  %vm772_vm6 = vcmp.lt.s32.totalorder %v2138_v9, %v771_v13 }
  0x21   :  { %v71_v42 = vld [vmem:[%s2365_s0 + $0x118] sm:$0xff]  ;;  %v72_v43 = vld [vmem:[%s2365_s0 + $0x120] sm:$0xff]  ;;  %v73_v44 = vld [vmem:[%s2365_s0 + $0x128] sm:$0xff] }
  0x22   :  { %1557 = vmatmul.mubr.msk.f32.gmra.mrb[10].mxu0 %vm112_vm0, %v47_v18  ;;  %v74_v45 = vld [vmem:[%s2365_s0 + $0x130] sm:$0xff]  ;;  %v75_v46 = vld [vmem:[%s2365_s0 + $0x138] sm:$0xff]  ;;  %v76_v47 = vld [vmem:[%s2365_s0 + $0x140] sm:$0xff] }
  0x23   :  { %1559 = vmatprep.mubr.msk.f32.mxu0 %vm112_vm0, %v48_v19  ;;  %v77_v48 = vld [vmem:[%s2365_s0 + $0x148] sm:$0xff]  ;;  %v78_v49 = vld [vmem:[%s2365_s0 + $0x150] sm:$0xff]  ;;  %v79_v50 = vld [vmem:[%s2365_s0 + $0x158] sm:$0xff] }
  0x24   :  { %v80_v51 = vld [vmem:[%s2365_s0 + $0x160] sm:$0xff]  ;;  %v81_v52 = vld [vmem:[%s2365_s0 + $0x168] sm:$0xff]  ;;  %v82_v53 = vld [vmem:[%s2365_s0 + $0x170] sm:$0xff] }
  0x25   :  { %v83_v54 = vld [vmem:[%s2365_s0 + $0x178] sm:$0xff]  ;;  %v84_v55 = vld [vmem:[%s2365_s0 + $0x180] sm:$0xff]  ;;  %v85_v56 = vld [vmem:[%s2365_s0 + $0x188] sm:$0xff] }
  0x26   :  { %1560 = vmatmul.mubr.msk.f32.gmra.mrb[12].mxu0 %vm112_vm0, %v49_v20  ;;  %v86_v57 = vld [vmem:[%s2365_s0 + $0x190] sm:$0xff]  ;;  %v87_v58 = vld [vmem:[%s2365_s0 + $0x198] sm:$0xff]  ;;  %v88_v59 = vld [vmem:[%s2365_s0 + $0x1a0] sm:$0xff] }
  0x27   :  { %1562 = vmatprep.mubr.msk.f32.mxu0 %vm112_vm0, %v50_v21  ;;  %v89_v60 = vld [vmem:[%s2365_s0 + $0x1a8] sm:$0xff]  ;;  %v90_v61 = vld [vmem:[%s2365_s0 + $0x1b0] sm:$0xff]  ;;  %v91_v62 = vld [vmem:[%s2365_s0 + $0x1b8] sm:$0xff] }
  0x28   :  { %v92_v63 = vld [vmem:[%s2365_s0 + $0x1c0] sm:$0xff]  ;;  %v93_v0 = vld [vmem:[%s2365_s0 + $0x1c8] sm:$0xff]  ;;  %v94_v1 = vld [vmem:[%s2365_s0 + $0x1d0] sm:$0xff] }
  0x29   :  { %v95_v2 = vld [vmem:[%s2365_s0 + $0x1d8] sm:$0xff]  ;;  %v96_v3 = vld [vmem:[%s2365_s0 + $0x1e0] sm:$0xff]  ;;  %v97_v4 = vld [vmem:[%s2365_s0 + $0x1e8] sm:$0xff] }
  0x2a   :  { %1563 = vmatmul.mubr.msk.f32.gmra.mrb[14].mxu0 %vm112_vm0, %v51_v22  ;;  %v98_v5 = vld [vmem:[%s2365_s0 + $0x1f0] sm:$0xff]  ;;  %v99_v6 = vld [vmem:[%s2365_s0 + $0x1f8] sm:$0xff]  ;;  %vm777_vm4 = vmand %vm767_vm2, %vm773_vm3  ;;  %v762_v22 = vadd.s32 384, %v2138_v9 }
  0x2b   :  { %1565 = vmatprep.mubr.msk.f32.mxu0 %vm112_vm0, %v52_v23  ;;  %1360 = vmatprep.mubr.msk.f32.mxu1 %vm777_vm4, %v1804_v14  ;;  %vm2149_vm7 = vmand %vm766_vm5, %vm772_vm6  ;;  %v2156_v16 = vld [vmem:[%s2367_s2] ss:$0 sm:$0xff]  ;;  %vm1110_vm4 = vcmask 130048   ;;  %vm1204_vm5 = vcmask 523264   ;;  %vm1278_vm6 = vcmask 123904  }
  0x2c   :  { %vm769_vm8 = vcmp.ge.s32.totalorder %v762_v22, %v765_v12  ;;  %vm775_vm9 = vcmp.lt.s32.totalorder %v762_v22, %v771_v13 }
  0x2d   :  { %vm2166_vm10 = vmand %vm769_vm8, %vm775_vm9 }
  0x2e   :  { %1566 = vmatmul.mubr.msk.f32.gmra.mrb[16].mxu0 %vm112_vm0, %v53_v24 }
  0x2f   :  { %1568 = vmatprep.mubr.msk.f32.mxu0 %vm112_vm0, %v54_v25  ;;  %v761_v25 = vadd.s32 256, %v2138_v9 }
  0x31   :  { %vm768_vm11 = vcmp.ge.s32.totalorder %v761_v25, %v765_v12  ;;  %vm774_vm12 = vcmp.lt.s32.totalorder %v761_v25, %v771_v13 }
  0x32   :  { %1569 = vmatmul.mubr.msk.f32.gmra.mrb[18].mxu0 %vm112_vm0, %v55_v26  ;;  %vm2170_vm13 = vmand %vm768_vm11, %vm774_vm12 }
  0x33   :  { %1571 = vmatprep.mubr.msk.f32.mxu0 %vm112_vm0, %v56_v27 }
  0x36   :  { %1572 = vmatmul.mubr.msk.f32.gmra.mrb[20].mxu0 %vm112_vm0, %v57_v28 }
  0x37   :  { %1574 = vmatprep.mubr.msk.f32.mxu0 %vm112_vm0, %v58_v29 }
  0x3a   :  { %1575 = vmatmul.mubr.msk.f32.gmra.mrb[22].mxu0 %vm112_vm0, %v59_v30 }
  0x3b   :  { %1577 = vmatprep.mubr.msk.f32.mxu0 %vm112_vm0, %v60_v31 }
  0x3e   :  { %1578 = vmatmul.mubr.msk.f32.gmra.mrb[24].mxu0 %vm112_vm0, %v61_v32 }
  0x3f   :  { %1580 = vmatprep.mubr.msk.f32.mxu0 %vm112_vm0, %v62_v33 }
  0x42   :  { %1581 = vmatmul.mubr.msk.f32.gmra.mrb[26].mxu0 %vm112_vm0, %v63_v34 }
  0x43   :  { %1583 = vmatprep.mubr.msk.f32.mxu0 %vm112_vm0, %v64_v35 }
  0x46   :  { %1584 = vmatmul.mubr.msk.f32.gmra.mrb[28].mxu0 %vm112_vm0, %v65_v36 }
  0x47   :  { %1586 = vmatprep.mubr.msk.f32.mxu0 %vm112_vm0, %v66_v37 }
  0x4a   :  { %1587 = vmatmul.mubr.msk.f32.gmra.mrb[30].mxu0 %vm112_vm0, %v67_v38 }
  0x4b   :  { %1589 = vmatprep.mubr.msk.f32.mxu0 %vm112_vm0, %v68_v39 }
  0x4e   :  { %1590 = vmatmul.mubr.msk.f32.gmra.mrb[32].mxu0 %vm112_vm0, %v69_v40 }
  0x4f   :  { %1592 = vmatprep.mubr.msk.f32.mxu0 %vm112_vm0, %v70_v41 }
  0x52   :  { %1593 = vmatmul.mubr.msk.f32.gmra.mrb[34].mxu0 %vm112_vm0, %v71_v42 }
  0x53   :  { %1595 = vmatprep.mubr.msk.f32.mxu0 %vm112_vm0, %v72_v43 }
  0x56   :  { %1596 = vmatmul.mubr.msk.f32.gmra.mrb[36].mxu0 %vm112_vm0, %v73_v44 }
  0x57   :  { %1598 = vmatprep.mubr.msk.f32.mxu0 %vm112_vm0, %v74_v45 }
  0x5a   :  { %1599 = vmatmul.mubr.msk.f32.gmra.mrb[38].mxu0 %vm112_vm0, %v75_v46 }
  0x5b   :  { %1601 = vmatprep.mubr.msk.f32.mxu0 %vm112_vm0, %v76_v47 }
  0x5e   :  { %1602 = vmatmul.mubr.msk.f32.gmra.mrb[40].mxu0 %vm112_vm0, %v77_v48 }
  0x5f   :  { %1604 = vmatprep.mubr.msk.f32.mxu0 %vm112_vm0, %v78_v49 }
  0x62   :  { %1605 = vmatmul.mubr.msk.f32.gmra.mrb[42].mxu0 %vm112_vm0, %v79_v50 }
  0x63   :  { %1607 = vmatprep.mubr.msk.f32.mxu0 %vm112_vm0, %v80_v51 }
  0x66   :  { %1608 = vmatmul.mubr.msk.f32.gmra.mrb[44].mxu0 %vm112_vm0, %v81_v52 }
  0x67   :  { %1610 = vmatprep.mubr.msk.f32.mxu0 %vm112_vm0, %v82_v53 }
  0x6a   :  { %1611 = vmatmul.mubr.msk.f32.gmra.mrb[46].mxu0 %vm112_vm0, %v83_v54 }
  0x6b   :  { %1613 = vmatprep.mubr.msk.f32.mxu0 %vm112_vm0, %v84_v55 }
  0x6e   :  { %1614 = vmatmul.mubr.msk.f32.gmra.mrb[48].mxu0 %vm112_vm0, %v85_v56 }
  0x6f   :  { %1616 = vmatprep.mubr.msk.f32.mxu0 %vm112_vm0, %v86_v57 }
  0x72   :  { %1617 = vmatmul.mubr.msk.f32.gmra.mrb[50].mxu0 %vm112_vm0, %v87_v58 }
  0x73   :  { %1619 = vmatprep.mubr.msk.f32.mxu0 %vm112_vm0, %v88_v59 }
  0x76   :  { %1620 = vmatmul.mubr.msk.f32.gmra.mrb[52].mxu0 %vm112_vm0, %v89_v60 }
  0x77   :  { %1622 = vmatprep.mubr.msk.f32.mxu0 %vm112_vm0, %v90_v61 }
  0x7a   :  { %1623 = vmatmul.mubr.msk.f32.gmra.mrb[54].mxu0 %vm112_vm0, %v91_v62 }
  0x7b   :  { %1625 = vmatprep.mubr.msk.f32.mxu0 %vm112_vm0, %v92_v63 }
  0x7e   :  { %1626 = vmatmul.mubr.msk.f32.gmra.mrb[56].mxu0 %vm112_vm0, %v93_v0 }
  0x7f   :  { %1628 = vmatprep.mubr.msk.f32.mxu0 %vm112_vm0, %v94_v1 }
  0x82   :  { %1629 = vmatmul.mubr.msk.f32.gmra.mrb[58].mxu0 %vm112_vm0, %v95_v2 }
  0x83   :  { %1631 = vmatprep.mubr.msk.f32.mxu0 %vm112_vm0, %v96_v3 }
  0x86   :  { %1632 = vmatmul.mubr.msk.f32.gmra.mrb[60].mxu0 %vm112_vm0, %v97_v4 }
  0x87   :  { %1634 = vmatprep.mubr.msk.f32.mxu0 %vm112_vm0, %v98_v5 }
  0x8a   :  { %1635 = vmatmul.mubr.msk.f32.gmra.mrb[62].mxu0 %vm112_vm0, %v99_v6  ;;  %vm1020_vm0 = vcmask 261120  }
  0xe1   :  { %v1543_v17 = vpop.f32.mrb[0].mxu0 }
  0xe2   :  { %v381_v18 = vadd.f32 %v1543_v17, %v2156_v16  ;;  %v375_v19 = vpop.f32.mrb[1].mxu0 }
  0xe3   :  { %v376_v20 = vadd.f32 %v2156_v16, %v375_v19 }
  0xe4   :  { %v695_v21 = vmax.f32 %v381_v18, 0.0 }
  0xe5   :  { %v694_v23 = vmax.f32 %v376_v20, 0.0  ;;  %v1546_v24 = vpop.f32.mrb[2].mxu0 }
  0xe6   :  { %v391_v26 = vadd.f32 %v1546_v24, %v2156_v16  ;;  %v385_v27 = vpop.f32.mrb[3].mxu0 }
  0xe7   :  { %v386_v28 = vadd.f32 %v2156_v16, %v385_v27  ;;  %v2164_v29 = vpack.c.bf16 %v695_v21, %v694_v23 }
  0xe8   :  { %v697_v31 = vmax.f32 %v391_v26, 0.0 }
  0xe9   :  { %v696_v33 = vmax.f32 %v386_v28, 0.0  ;;  %v1549_v34 = vpop.f32.mrb[4].mxu0 }
  0xea   :  { %v401_v35 = vadd.f32 %v1549_v34, %v2156_v16  ;;  %v395_v36 = vpop.f32.mrb[5].mxu0 }
  0xeb   :  { %v2175_v37 = vpack.c.bf16 %v697_v31, %v696_v33  ;;  %v396_v38 = vadd.f32 %v2156_v16, %v395_v36 }
  0xec   :  { %v699_v39 = vmax.f32 %v401_v35, 0.0 }
  0xed   :  { %v698_v40 = vmax.f32 %v396_v38, 0.0  ;;  %v1552_v41 = vpop.f32.mrb[6].mxu0 }
  0xee   :  { %v411_v42 = vadd.f32 %v1552_v41, %v2156_v16  ;;  %v405_v43 = vpop.f32.mrb[7].mxu0 }
  0xef   :  { %v2179_v44 = vpack.c.bf16 %v699_v39, %v698_v40  ;;  %v406_v45 = vadd.f32 %v2156_v16, %v405_v43 }
  0xf0   :  { %v701_v46 = vmax.f32 %v411_v42, 0.0 }
  0xf1   :  { %v700_v47 = vmax.f32 %v406_v45, 0.0  ;;  %v1555_v48 = vpop.f32.mrb[8].mxu0 }
  0xf2   :  { %v421_v49 = vadd.f32 %v1555_v48, %v2156_v16  ;;  %v415_v50 = vpop.f32.mrb[9].mxu0 }
  0xf3   :  { %v2183_v51 = vpack.c.bf16 %v701_v46, %v700_v47  ;;  %v416_v52 = vadd.f32 %v2156_v16, %v415_v50 }
  0xf4   :  { %v703_v53 = vmax.f32 %v421_v49, 0.0 }
  0xf5   :  { %v702_v54 = vmax.f32 %v416_v52, 0.0  ;;  %v1558_v55 = vpop.f32.mrb[10].mxu0 }
  0xf6   :  { %v431_v56 = vadd.f32 %v1558_v55, %v2156_v16  ;;  %v425_v57 = vpop.f32.mrb[11].mxu0 }
  0xf7   :  { %v2187_v58 = vpack.c.bf16 %v703_v53, %v702_v54  ;;  %v426_v59 = vadd.f32 %v2156_v16, %v425_v57 }
  0xf8   :  { %v705_v60 = vmax.f32 %v431_v56, 0.0 }
  0xf9   :  { %v704_v61 = vmax.f32 %v426_v59, 0.0  ;;  %v1561_v62 = vpop.f32.mrb[12].mxu0 }
  0xfa   :  { %v441_v63 = vadd.f32 %v1561_v62, %v2156_v16  ;;  %v435_v0 = vpop.f32.mrb[13].mxu0 }
  0xfb   :  { %v2191_v1 = vpack.c.bf16 %v705_v60, %v704_v61  ;;  %v436_v2 = vadd.f32 %v2156_v16, %v435_v0 }
  0xfc   :  { %v707_v3 = vmax.f32 %v441_v63, 0.0 }
  0xfd   :  { %v706_v4 = vmax.f32 %v436_v2, 0.0  ;;  %v1564_v5 = vpop.f32.mrb[14].mxu0 }
  0xfe   :  { %v451_v6 = vadd.f32 %v1564_v5, %v2156_v16  ;;  %v445_v7 = vpop.f32.mrb[15].mxu0 }
  0xff   :  { %v2195_v11 = vpack.c.bf16 %v707_v3, %v706_v4  ;;  %v446_v12 = vadd.f32 %v2156_v16, %v445_v7 }
 0x100   :  { %v709_v13 = vmax.f32 %v451_v6, 0.0 }
 0x101   :  { %v708_v17 = vmax.f32 %v446_v12, 0.0  ;;  %v1567_v18 = vpop.f32.mrb[16].mxu0 }
 0x102   :  { %v461_v19 = vadd.f32 %v1567_v18, %v2156_v16  ;;  %v455_v20 = vpop.f32.mrb[17].mxu0 }
 0x103   :  { %v2199_v21 = vpack.c.bf16 %v709_v13, %v708_v17  ;;  %v456_v22 = vadd.f32 %v2156_v16, %v455_v20 }
 0x104   :  { %v711_v23 = vmax.f32 %v461_v19, 0.0 }
 0x105   :  { %v710_v24 = vmax.f32 %v456_v22, 0.0  ;;  %v1570_v25 = vpop.f32.mrb[18].mxu0 }
 0x106   :  { %v471_v26 = vadd.f32 %v1570_v25, %v2156_v16  ;;  %v465_v27 = vpop.f32.mrb[19].mxu0 }
 0x107   :  { %v466_v28 = vadd.f32 %v2156_v16, %v465_v27  ;;  %v1687_v31 = vpack.c.bf16 %v711_v23, %v710_v24 }
 0x108   :  { %v713_v33 = vmax.f32 %v471_v26, 0.0 }
 0x109   :  { %v712_v34 = vmax.f32 %v466_v28, 0.0  ;;  %v1573_v35 = vpop.f32.mrb[20].mxu0  ;;  %1688 = vmatprep.subr.bf16.mxu1 %v1687_v31 }
 0x10a   :  { %v481_v36 = vadd.f32 %v1573_v35, %v2156_v16  ;;  %v475_v38 = vpop.f32.mrb[21].mxu0  ;;  %1690 = vmatpush3.bf16.msra.mxu1 %v2164_v29 }
 0x10b   :  { %v1691_v39 = vpack.c.bf16 %v713_v33, %v712_v34  ;;  %v476_v40 = vadd.f32 %v2156_v16, %v475_v38 }
 0x10c   :  { %v715_v41 = vmax.f32 %v481_v36, 0.0 }
 0x10d   :  { %v714_v42 = vmax.f32 %v476_v40, 0.0  ;;  %v1576_v43 = vpop.f32.mrb[22].mxu0  ;;  %1692 = vmatprep.subr.bf16.mxu1 %v1691_v39 }
 0x10e   :  { %v491_v45 = vadd.f32 %v1576_v43, %v2156_v16  ;;  %v485_v46 = vpop.f32.mrb[23].mxu0  ;;  %1694 = vmatpush3.bf16.msra.mxu1 %v2175_v37 }
 0x10f   :  { %v1695_v47 = vpack.c.bf16 %v715_v41, %v714_v42  ;;  %v486_v48 = vadd.f32 %v2156_v16, %v485_v46 }
 0x110   :  { %v717_v49 = vmax.f32 %v491_v45, 0.0 }
 0x111   :  { %v716_v50 = vmax.f32 %v486_v48, 0.0  ;;  %v1579_v52 = vpop.f32.mrb[24].mxu0  ;;  %1696 = vmatprep.subr.bf16.mxu1 %v1695_v47 }
 0x112   :  { %v501_v29 = vadd.f32 %v1579_v52, %v2156_v16  ;;  %v495_v53 = vpop.f32.mrb[25].mxu0  ;;  %1698 = vmatpush3.bf16.msra.mxu1 %v2179_v44 }
 0x113   :  { %v1699_v54 = vpack.c.bf16 %v717_v49, %v716_v50  ;;  %v496_v55 = vadd.f32 %v2156_v16, %v495_v53 }
 0x114   :  { %v719_v56 = vmax.f32 %v501_v29, 0.0 }
 0x115   :  { %v718_v57 = vmax.f32 %v496_v55, 0.0  ;;  %v1582_v59 = vpop.f32.mrb[26].mxu0  ;;  %1700 = vmatprep.subr.bf16.mxu1 %v1699_v54 }
 0x116   :  { %v511_v37 = vadd.f32 %v1582_v59, %v2156_v16  ;;  %v505_v60 = vpop.f32.mrb[27].mxu0  ;;  %1702 = vmatpush3.bf16.msra.mxu1 %v2183_v51 }
 0x117   :  { %v1703_v61 = vpack.c.bf16 %v719_v56, %v718_v57  ;;  %v506_v62 = vadd.f32 %v2156_v16, %v505_v60 }
 0x118   :  { %v721_v63 = vmax.f32 %v511_v37, 0.0 }
 0x119   :  { %v720_v0 = vmax.f32 %v506_v62, 0.0  ;;  %v1585_v2 = vpop.f32.mrb[28].mxu0  ;;  %1704 = vmatprep.subr.bf16.mxu1 %v1703_v61 }
 0x11a   :  { %v521_v44 = vadd.f32 %v1585_v2, %v2156_v16  ;;  %v515_v3 = vpop.f32.mrb[29].mxu0  ;;  %1706 = vmatpush3.bf16.msra.mxu1 %v2187_v58 }
 0x11b   :  { %v1707_v4 = vpack.c.bf16 %v721_v63, %v720_v0  ;;  %v516_v5 = vadd.f32 %v2156_v16, %v515_v3 }
 0x11c   :  { %v723_v6 = vmax.f32 %v521_v44, 0.0 }
 0x11d   :  { %v722_v7 = vmax.f32 %v516_v5, 0.0  ;;  %v1588_v12 = vpop.f32.mrb[30].mxu0  ;;  %1708 = vmatprep.subr.bf16.mxu1 %v1707_v4 }
 0x11e   :  { %v531_v51 = vadd.f32 %v1588_v12, %v2156_v16  ;;  %v525_v13 = vpop.f32.mrb[31].mxu0  ;;  %1710 = vmatpush3.bf16.msra.mxu1 %v2191_v1 }
 0x11f   :  { %v1711_v17 = vpack.c.bf16 %v723_v6, %v722_v7  ;;  %v526_v18 = vadd.f32 %v2156_v16, %v525_v13 }
 0x120   :  { %v725_v19 = vmax.f32 %v531_v51, 0.0 }
 0x121   :  { %v724_v20 = vmax.f32 %v526_v18, 0.0  ;;  %v1591_v22 = vpop.f32.mrb[32].mxu0  ;;  %1712 = vmatprep.subr.bf16.mxu1 %v1711_v17 }
 0x122   :  { %v541_v58 = vadd.f32 %v1591_v22, %v2156_v16  ;;  %v535_v23 = vpop.f32.mrb[33].mxu0  ;;  %1714 = vmatpush3.bf16.msra.mxu1 %v2195_v11 }
 0x123   :  { %v1715_v24 = vpack.c.bf16 %v725_v19, %v724_v20  ;;  %v536_v25 = vadd.f32 %v2156_v16, %v535_v23 }
 0x124   :  { %v727_v26 = vmax.f32 %v541_v58, 0.0 }
 0x125   :  { %v726_v27 = vmax.f32 %v536_v25, 0.0  ;;  %v1594_v28 = vpop.f32.mrb[34].mxu0  ;;  %1716 = vmatprep.subr.bf16.mxu1 %v1715_v24 }
 0x126   :  { %v551_v1 = vadd.f32 %v1594_v28, %v2156_v16  ;;  %v545_v31 = vpop.f32.mrb[35].mxu0  ;;  %1718 = vmatpush3.bf16.msra.mxu1 %v2199_v21 }
 0x127   :  { %v2227_v33 = vpack.c.bf16 %v727_v26, %v726_v27  ;;  %v546_v34 = vadd.f32 %v2156_v16, %v545_v31 }
 0x128   :  { %v729_v35 = vmax.f32 %v551_v1, 0.0 }
 0x129   :  { %v728_v36 = vmax.f32 %v546_v34, 0.0  ;;  %v1597_v38 = vpop.f32.mrb[36].mxu0  ;;  %1361 = vmatmul.mubr.msk.f32.vlgmr.msra.gmra.mrb[0].mxu1 %vm2149_vm7, %v1804_v14 }
 0x12a   :  { %v561_v11 = vadd.f32 %v1597_v38, %v2156_v16  ;;  %v555_v39 = vpop.f32.mrb[37].mxu0  ;;  %1362 = vmatprep.mubr.msk.f32.mxu1 %vm2166_vm10, %v1804_v14 }
 0x12b   :  { %v2237_v40 = vpack.c.bf16 %v729_v35, %v728_v36  ;;  %v556_v21 = vadd.f32 %v2156_v16, %v555_v39 }
 0x12c   :  { %v731_v41 = vmax.f32 %v561_v11, 0.0 }
 0x12d   :  { %v730_v42 = vmax.f32 %v556_v21, 0.0  ;;  %v1600_v43 = vpop.f32.mrb[38].mxu0 }
 0x12e   :  { %v571_v45 = vadd.f32 %v1600_v43, %v2156_v16  ;;  %v565_v46 = vpop.f32.mrb[39].mxu0 }
 0x12f   :  { %v2241_v47 = vpack.c.bf16 %v731_v41, %v730_v42  ;;  %v566_v15 = vadd.f32 %v2156_v16, %v565_v46 }
 0x130   :  { %v733_v48 = vmax.f32 %v571_v45, 0.0 }
 0x131   :  { %v732_v49 = vmax.f32 %v566_v15, 0.0  ;;  %v1603_v50 = vpop.f32.mrb[40].mxu0 }
 0x132   :  { %v581_v30 = vadd.f32 %v1603_v50, %v2156_v16  ;;  %v575_v52 = vpop.f32.mrb[41].mxu0 }
 0x133   :  { %v2245_v29 = vpack.c.bf16 %v733_v48, %v732_v49  ;;  %v576_v53 = vadd.f32 %v2156_v16, %v575_v52 }
 0x134   :  { %v735_v54 = vmax.f32 %v581_v30, 0.0 }
 0x135   :  { %v734_v55 = vmax.f32 %v576_v53, 0.0  ;;  %v1606_v56 = vpop.f32.mrb[42].mxu0 }
 0x136   :  { %v591_v57 = vadd.f32 %v1606_v56, %v2156_v16  ;;  %v585_v59 = vpop.f32.mrb[43].mxu0 }
 0x137   :  { %v2249_v37 = vpack.c.bf16 %v735_v54, %v734_v55  ;;  %v586_v60 = vadd.f32 %v2156_v16, %v585_v59 }
 0x138   :  { %v737_v61 = vmax.f32 %v591_v57, 0.0 }
 0x139   :  { %v736_v62 = vmax.f32 %v586_v60, 0.0  ;;  %v1609_v63 = vpop.f32.mrb[44].mxu0 }
 0x13a   :  { %v601_v0 = vadd.f32 %v1609_v63, %v2156_v16  ;;  %v595_v2 = vpop.f32.mrb[45].mxu0 }
 0x13b   :  { %v2253_v44 = vpack.c.bf16 %v737_v61, %v736_v62  ;;  %v596_v3 = vadd.f32 %v2156_v16, %v595_v2 }
 0x13c   :  { %v739_v4 = vmax.f32 %v601_v0, 0.0 }
 0x13d   :  { %v738_v5 = vmax.f32 %v596_v3, 0.0  ;;  %v1612_v6 = vpop.f32.mrb[46].mxu0 }
 0x13e   :  { %v611_v7 = vadd.f32 %v1612_v6, %v2156_v16  ;;  %v605_v12 = vpop.f32.mrb[47].mxu0 }
 0x13f   :  { %v2257_v51 = vpack.c.bf16 %v739_v4, %v738_v5  ;;  %v606_v13 = vadd.f32 %v2156_v16, %v605_v12 }
 0x140   :  { %v741_v17 = vmax.f32 %v611_v7, 0.0 }
 0x141   :  { %v740_v18 = vmax.f32 %v606_v13, 0.0  ;;  %v1615_v19 = vpop.f32.mrb[48].mxu0 }
 0x142   :  { %v621_v20 = vadd.f32 %v1615_v19, %v2156_v16  ;;  %v615_v22 = vpop.f32.mrb[49].mxu0 }
 0x143   :  { %v2261_v58 = vpack.c.bf16 %v741_v17, %v740_v18  ;;  %v616_v23 = vadd.f32 %v2156_v16, %v615_v22 }
 0x144   :  { %v743_v24 = vmax.f32 %v621_v20, 0.0  ;;  %v1805_v20 = vmov 0.0  }
 0x145   :  { %v742_v25 = vmax.f32 %v616_v23, 0.0  ;;  %v1618_v26 = vpop.f32.mrb[50].mxu0 }
 0x146   :  { %v631_v27 = vadd.f32 %v1618_v26, %v2156_v16  ;;  %v625_v28 = vpop.f32.mrb[51].mxu0  ;;  %v1012_v26 = vld [vmem:[%s2371_s6 + $0x18] sm:$0xff] }
 0x147   :  { %v1719_v1 = vpack.c.bf16 %v743_v24, %v742_v25  ;;  %v626_v31 = vadd.f32 %v2156_v16, %v625_v28  ;;  %v1011_v25 = vld [vmem:[%s2371_s6 + $0x10] sm:$0xff] }
 0x148   :  { %v745_v34 = vmax.f32 %v631_v27, 0.0 }
 0x149   :  { %v744_v35 = vmax.f32 %v626_v31, 0.0  ;;  %v1621_v36 = vpop.f32.mrb[52].mxu0  ;;  %1720 = vmatprep.subr.bf16.mxu1 %v1719_v1  ;;  %v1755_v1 = vpack.c.bf16 %v1012_v26, %v1011_v25  ;;  %v1007_v31 = vld [vmem:[%s2370_s5] sm:$0xff] }
 0x14a   :  { %v641_v38 = vadd.f32 %v1621_v36, %v2156_v16  ;;  %v635_v11 = vpop.f32.mrb[53].mxu0  ;;  %1722 = vmatpush3.bf16.msra.mxu1 %v2227_v33 }
 0x14b   :  { %v1723_v39 = vpack.c.bf16 %v745_v34, %v744_v35  ;;  %v636_v21 = vadd.f32 %v2156_v16, %v635_v11  ;;  %v1008_v34 = vld [vmem:[%s2370_s5 + $0x8] sm:$0xff]  ;;  %v1807_v35 = vmov 0.0|0.0   ;;  %v1366_v11 = vld [vmem:[%s2372_s7] ss:$0 sm:$0xff] }
 0x14c   :  { %v747_v41 = vmax.f32 %v641_v38, 0.0 }
 0x14d   :  { %v746_v42 = vmax.f32 %v636_v21, 0.0  ;;  %v1624_v43 = vpop.f32.mrb[54].mxu0  ;;  %1724 = vmatprep.subr.bf16.mxu1 %v1723_v39  ;;  %v1104_v39 = vmul.u32 8, %v2136_v8  ;;  %v1106_v21 = vmul.u32 8, %v2141_v10  ;;  %v1189_v8 = vld [vmem:[%s2373_s8] sm:$0xff]  ;;  %v1190_v10 = vld [vmem:[%s2373_s8 + $0x8] sm:$0xff] }
 0x14e   :  { %v651_v45 = vadd.f32 %v1624_v43, %v2156_v16  ;;  %v645_v46 = vpop.f32.mrb[55].mxu0  ;;  %1726 = vmatpush3.bf16.msra.mxu1 %v2237_v40 }
 0x14f   :  { %v1727_v15 = vpack.c.bf16 %v747_v41, %v746_v42  ;;  %v646_v48 = vadd.f32 %v2156_v16, %v645_v46  ;;  %vm1105_vm1 = vcmp.ge.s32.totalorder %v2138_v9, %v1104_v39  ;;  %vm1107_vm2 = vcmp.lt.s32.totalorder %v2138_v9, %v1106_v21  ;;  %v1191_v9 = vld [vmem:[%s2373_s8 + $0x10] sm:$0xff] }
 0x150   :  { %v749_v49 = vmax.f32 %v651_v45, 0.0  ;;  %vm1108_vm3 = vmand %vm1105_vm1, %vm1107_vm2 }
 0x151   :  { %v748_v50 = vmax.f32 %v646_v48, 0.0  ;;  %v1627_v30 = vpop.f32.mrb[56].mxu0  ;;  %1728 = vmatprep.subr.bf16.mxu1 %v1727_v15 }
 0x152   :  { %v661_v33 = vadd.f32 %v1627_v30, %v2156_v16  ;;  %v655_v52 = vpop.f32.mrb[57].mxu0  ;;  %1730 = vmatpush3.bf16.msra.mxu1 %v2241_v47  ;;  %v1192_v30 = vld [vmem:[%s2373_s8 + $0x18] sm:$0xff] }
 0x153   :  { %v1731_v53 = vpack.c.bf16 %v749_v49, %v748_v50  ;;  %v656_v54 = vadd.f32 %v2156_v16, %v655_v52  ;;  %v1109_v49 = vsel %vm1108_vm3, 0.125, %v1805_v20  ;;  %v1763_v50 = vpack.c.bf16 %v1190_v10, %v1189_v8  ;;  %v1193_v52 = vld [vmem:[%s2373_s8 + $0x20] sm:$0xff] }
 0x154   :  { %v751_v55 = vmax.f32 %v661_v33, 0.0  ;;  %v1766_v33 = vpack.c.bf16 %v1192_v30, %v1191_v9 }
 0x155   :  { %v750_v56 = vmax.f32 %v656_v54, 0.0  ;;  %v1630_v57 = vpop.f32.mrb[58].mxu0  ;;  %1732 = vmatprep.subr.bf16.mxu1 %v1731_v53  ;;  %v1194_v53 = vld [vmem:[%s2373_s8 + $0x28] sm:$0xff] }
 0x156   :  { %v671_v40 = vadd.f32 %v1630_v57, %v2156_v16  ;;  %v665_v59 = vpop.f32.mrb[59].mxu0  ;;  %1734 = vmatpush3.bf16.msra.mxu1 %v2245_v29  ;;  %v1769_v54 = vpack.c.bf16 %v1194_v53, %v1193_v52 }
 0x157   :  { %v1735_v60 = vpack.c.bf16 %v751_v55, %v750_v56  ;;  %v666_v61 = vadd.f32 %v2156_v16, %v665_v59  ;;  %v1195_v55 = vld [vmem:[%s2373_s8 + $0x30] sm:$0xff]  ;;  %v1196_v56 = vld [vmem:[%s2373_s8 + $0x38] sm:$0xff] }
 0x158   :  { %v753_v62 = vmax.f32 %v671_v40, 0.0  ;;  %v1772_v57 = vpack.c.bf16 %v1196_v56, %v1195_v55 }
 0x159   :  { %v752_v63 = vmax.f32 %v666_v61, 0.0  ;;  %v1633_v0 = vpop.f32.mrb[60].mxu0  ;;  %1736 = vmatprep.subr.bf16.mxu1 %v1735_v60  ;;  %v1364_v60 = vld [vmem:[%s2369_s4] ss:$0 sm:$0xff] }
 0x15a   :  { %v681_v47 = vadd.f32 %v1633_v0, %v2156_v16  ;;  %v675_v2 = vpop.f32.mrb[61].mxu0  ;;  %1738 = vmatpush3.bf16.msra.mxu1 %v2249_v37 }
 0x15b   :  { %v1739_v3 = vpack.c.bf16 %v753_v62, %v752_v63  ;;  %v676_v4 = vadd.f32 %v2156_v16, %v675_v2 }
 0x15c   :  { %v755_v5 = vmax.f32 %v681_v47, 0.0  ;;  %v1370_v47 = vld [vmem:[%s2374_s9] ss:$0 sm:$0xff] }
 0x15d   :  { %v754_v6 = vmax.f32 %v676_v4, 0.0  ;;  %v1636_v7 = vpop.f32.mrb[62].mxu0  ;;  %1740 = vmatprep.subr.bf16.mxu1 %v1739_v3 }
 0x15e   :  { %v691_v29 = vadd.f32 %v1636_v7, %v2156_v16  ;;  %v685_v12 = vpop.f32.mrb[63].mxu0  ;;  %1742 = vmatpush3.bf16.msra.mxu1 %v2253_v44  ;;  %v1009_v44 = vld [vmem:[%s2371_s6] sm:$0xff] }
 0x15f   :  { %v1743_v13 = vpack.c.bf16 %v755_v5, %v754_v6  ;;  %v686_v17 = vadd.f32 %v2156_v16, %v685_v12  ;;  %v1010_v16 = vld [vmem:[%s2371_s6 + $0x8] sm:$0xff] }
 0x160   :  { %v757_v18 = vmax.f32 %v691_v29, 0.0  ;;  %v1751_v22 = vpack.c.bf16 %v1010_v16, %v1009_v44 }
 0x161   :  { %v756_v19 = vmax.f32 %v686_v17, 0.0  ;;  %1744 = vmatprep.subr.bf16.mxu1 %v1743_v13 }
 0x162   :  { %1746 = vmatpush3.bf16.msra.mxu1 %v2257_v51  ;;  %v924_v51 = vld [vmem:[%s2368_s3] sm:$0xff]  ;;  %s1286_s3 = sshll.u32 %s1809_s13, 4  ;;  %s1287_s3 = int_to_ptr.vmem [resolvable:$true] %s1286_s3 }
 0x163   :  { %v1747_v37 = vpack.c.bf16 %v757_v18, %v756_v19  ;;  %s1780_s4 = scalar_lea.vmem %s1287_s3, 32  ;;  %p1785_p1 = scmp.lt.s32.totalorder %s1287_s3, %s1287_s3 }
 0x164   :  { %p1781_p0 = scmp.ne.s32.totalorder %s1287_s3, %s1780_s4  ;;  %p1786_p2 = scmp.lt.s32.totalorder %s1780_s4, %s1780_s4 }
 0x165   :  { %1748 = vmatprep.subr.bf16.mxu1 %v1747_v37 }
 0x166   :  { %1750 = vmatpush3.bf16.msra.mxu1 %v2261_v58  ;;  %p1787_p3 = por %p1786_p2, %p1785_p1 }
 0x167   :  { %1637 = vmatprep.subr.mxu1 %v1805_v20 }
 0x168   :  { %p1788_p4 = pnand %p1787_p3, %p1781_p0 }
 0x169   :  { %1363 = vmatmul.mubr.msk.f32.vlgmr.msra.gmra.mrb[2].mxu1 %vm2170_vm13, %v1804_v14 }
 0x16a   :  { %1638 = vmatpush3.msra.mxu1 %v924_v51  ;;  %1639 = vmatprep.mubr.msk.f32.mxu1 %vm1806_vm14, %v1805_v20 }
 0x16b   :  { %1752 = vmatprep.subr.bf16.mxu1 %v1751_v22 }
 0x1fc   :  { %v1473_v14 = vpop.f32.mrb[0].mxu1 }
 0x1fd   :  { %v1474_v32 = vpop.f32.mrb[1].mxu1 }
 0x1fe   :  { %v1475_v58 = vadd.f32 %v1474_v32, %v1473_v14 }
 0x23c   :  { %v1508_v23 = vpop.f32.mrb[2].mxu1 }
 0x23d   :  { %v1509_v24 = vpop.f32.mrb[3].mxu1 }
 0x23e   :  { %v1510_v27 = vadd.f32 %v1509_v24, %v1508_v23 }
 0x240   :  { %v921_v28 = vadd.f32 %v1510_v27, %v1475_v58 }
 0x242   :  { %1640 = vmatmul.mubr.msk.f32.vlgmr.msra.gmra.mrb[4].mxu1 %vm932_vm15, %v921_v28 }
 0x243   :  { %1754 = vmatpush3.bf16.msra.mxu1 %v1751_v22  ;;  %1650 = vmatprep.mubr.msk.f32.mxu1 %vm1020_vm0, %v1007_v31 }
 0x244   :  { %1756 = vmatprep.subr.bf16.mxu1 %v1755_v1 }
 0x247   :  { %1758 = vmatpush3.bf16.msra.mxu1 %v1755_v1 }
 0x248   :  { %1759 = vmatprep.subr.bf16.mxu1 %v1807_v35 }
 0x24a   :  { %1651 = vmatmul.mubr.msk.f32.vlgmr.msra.gmra.mrb[6].mxu1 %vm1020_vm0, %v1008_v34 }
 0x24b   :  { %1657 = vmatprep.mubr.msk.f32.mxu1 %vm1806_vm14, %v1805_v20 }
 0x315   :  { %v1002_v36 = vpop.f32.mrb[4].mxu1 }
 0x316   :  { %v1641_v38 = vpop.f32.mrb[5].mxu1  ;;  %v1003_v61 = vadd.f32 %v1364_v60, %v1002_v36 }
 0x318   :  { %v1006_v62 = vmax.f32 %v1003_v61, 0.0 }
 0x31d   :  { %v1652_v41 = vpop.f32.mrb[6].mxu1 }
 0x31e   :  { %v1099_v42 = vadd.f32 %v1652_v41, %v1366_v11  ;;  %v1093_v43 = vpop.f32.mrb[7].mxu1 }
 0x31f   :  { %v1094_v45 = vadd.f32 %v1366_v11, %v1093_v43 }
 0x320   :  { %v1103_v46 = vmax.f32 %v1099_v42, 0.0 }
 0x321   :  { %v1102_v15 = vmax.f32 %v1094_v45, 0.0 }
 0x323   :  { %v1760_v48 = vpack.c.bf16 %v1103_v46, %v1102_v15 }
 0x325   :  { %1761 = vmatpush3.bf16.msra.mxu1 %v1760_v48 }
 0x326   :  { %1762 = vmatprep.subr.bf16.mxu1 %v1807_v35 }
 0x328   :  { %1658 = vmatmul.mubr.msk.f32.vlgmr.msra.gmra.mrb[8].mxu1 %vm1110_vm4, %v1109_v49 }
 0x329   :  { %1676 = vmatprep.mubr.msk.f32.mxu1 %vm1806_vm14, %v1805_v20  ;;  %1764 = vmatpush3.bf16.msra.mxu1 %v1763_v50 }
 0x32a   :  { %1765 = vmatprep.subr.bf16.mxu1 %v1807_v35 }
 0x32d   :  { %1767 = vmatpush3.bf16.msra.mxu1 %v1766_v33 }
 0x32e   :  { %1768 = vmatprep.subr.bf16.mxu1 %v1807_v35 }
 0x331   :  { %1770 = vmatpush3.bf16.msra.mxu1 %v1769_v54 }
 0x332   :  { %1771 = vmatprep.subr.bf16.mxu1 %v1807_v35 }
 0x335   :  { %1773 = vmatpush3.bf16.msra.mxu1 %v1772_v57 }
 0x3fb   :  { %v1180_v40 = vpop.f32.mrb[8].mxu1 }
 0x3fc   :  { %v1659_v59 = vpop.f32.mrb[9].mxu1  ;;  %1185 = vrot.lane.b32.xlu0 %v1180_v40, %s1808_s30 }
 0x46e   :  { %v1186_v63 = vpop.permute.xlu0 %1185 }
 0x46f   :  { %v1188_v0 = vsel %vm1020_vm0, %v1006_v62, %v1186_v63 }
 0x470   :  { %1677 = vmatmul.mubr.msk.f32.vlgmr.msra.gmra.mrb[10].mxu1 %vm1204_vm5, %v1188_v0 }
 0x543   :  { %v1274_v2 = vpop.f32.mrb[10].mxu1 }
 0x544   :  { %v1275_v3 = vadd.f32 %v1370_v47, %v1274_v2  ;;  %v1678_v4 = vpop.f32.mrb[11].mxu1 }
 0x546   :  { %1279 = vst.msk [vmem:[#allocation2] sm:$0x3] %vm1278_vm6, %v1275_v3 }
 0x547   :  { %1791 = shalt.err (!%p1788_p4)
}
 0x548   :  { %s1792_s16 = scalar_lea.hbm %s2375_s10, 32 }
 0x549   :  { %p1793_p5 = scmp.ne.s32.totalorder %s2375_s10, %s1792_s16  ;;  %p1796_p6 = scmp.lt.u32.totalorder %s1792_s16, %s2375_s10 }
 0x54b   :  { %p1798_p7 = pnand %p1796_p6, %p1793_p5 }
 0x54d   :  { %1801 = shalt.err (!%p1798_p7)
}
 0x54e   :  { %1289 = dma.vmem_to_hbm [thread:$0]  %s1287_s3, 32, %s2375_s10, [#allocation3]  }
 0x54f   :  { %1802 = dma.done.wait [#allocation3], 32  }
 0x550   :  { %1803 = vsyncadd [#allocation3], 4294967264 }
 0x551   :  { %1293 = vsyncpa [#allocation3], 1 }

</bundles_post_ra>
